<compile_context>
chip_gen: v7x
topology: tpu7x:2x2x1
jax: 0.10.0
libtpu: 0.0.40
codegen_flags: <defaults>
</compile_context>

<pallas_src>
import math

import jax
import jax.numpy as jnp
from jax.experimental import pallas as pl
from jax.experimental.pallas import tpu as pltpu


_LANE = 128
_SUBLANE = {4: 8, 2: 16, 1: 32}          # sublane packing by itemsize: f32 / bf16 / int8
# ~8 MiB blocks: (in + out) * double buffering ~= 32 MiB of VMEM.
_TARGET_BLOCK_BYTES = 8 << 20
# 48 MiB scoped VMEM: headroom over the 32 MiB working set, under v7x's 64 MiB physical
# VMEM and well under v5e/v6e's 128 MiB.
_VMEM_LIMIT_BYTES = 48 * 1024 * 1024
# Keep a few grid steps so the BlockSpec pipeline can overlap DMA with compute
# and both v7x TensorCores get work on the "parallel" axis.
_MIN_GRID_STEPS = 8
# Lane-dense slab widths tried (largest first) when the flat size is a multiple of 128.
_COL_CANDIDATES = (2048, 1024, 512, 256, 128)


def _gelu_kernel(x_ref, o_ref):
    # Exact (erf-based) GeLU, computed in f32, stored in the output dtype.
    # TODO(synk): on v7x (3.2 TB/s HBM) the f32 erf VALU polynomial may cap the kernel
    # slightly below the HBM roofline; a tanh/exp (EUP) formulation would be faster but
    # changes numerics vs. the exact-erf spec of this module.
    x = x_ref[...].astype(jnp.float32)
    inv_sqrt2 = jnp.float32(1.0 / math.sqrt(2.0))
    y = x * 0.5 * (1.0 + jax.lax.erf(x * inv_sqrt2))
    o_ref[...] = y.astype(o_ref.dtype)


def _pick_2d_shape(x: jax.Array):
    """Pick a zero-copy 2-D view (rows, cols) of x — no padding, no slicing."""
    n = x.size
    if n % _LANE == 0:
        # Lane-dense slab: widest candidate column count that divides the flat size.
        for cols in _COL_CANDIDATES:
            if n % cols == 0:
                return n // cols, cols
    # Ragged fallback (flat size not a multiple of 128): keep the natural trailing
    # dim as the lane axis (full-extent last block dim). Stores may be lane-masked,
    # but this avoids the pad + slice round-trip (each a full extra HBM read+write).
    cols = x.shape[-1] if x.ndim >= 1 else 1
    return n // cols, cols


def _pick_tile_rows(rows: int, cols: int, itemsize: int) -> int:
    """Rows per block: ~8 MiB, sublane-aligned, with enough grid steps to pipeline."""
    sub = _SUBLANE.get(itemsize, 8)
    budget_rows = max(1, _TARGET_BLOCK_BYTES // (cols * itemsize))
    tr = max(sub, (budget_rows // sub) * sub)
    # Keep >= _MIN_GRID_STEPS steps when the input is big enough (pipelining / megacore).
    cap = pl.cdiv(pl.cdiv(rows, _MIN_GRID_STEPS), sub) * sub
    tr = min(tr, max(sub, cap))
    # Don't exceed the sublane-rounded row count (bounds VMEM waste on small inputs).
    tr = min(tr, pl.cdiv(rows, sub) * sub)
    if tr >= rows:
        return rows          # single full-extent block (always a legal block shape)
    return tr                # multiple of the sublane packing; last block may be partial


def gelu_pallas(x: jax.Array, *, donate_input: bool = False) -> jax.Array:
    """Exact GeLU: x * 0.5 * (1 + erf(x / sqrt(2))), elementwise Pallas TPU kernel."""
    if x.size == 0:
        return x

    rows, cols = _pick_2d_shape(x)
    itemsize = jnp.dtype(x.dtype).itemsize
    tile_rows = _pick_tile_rows(rows, cols, itemsize)
    grid = (pl.cdiv(rows, tile_rows),)

    # Zero-copy (row-major) view — no pad, no slice, no extra HBM pass.
    x2 = x.reshape(rows, cols)

    out = pl.pallas_call(
        _gelu_kernel,
        out_shape=jax.ShapeDtypeStruct((rows, cols), x.dtype),
        grid_spec=pltpu.PrefetchScalarGridSpec(
            num_scalar_prefetch=0,
            grid=grid,
            in_specs=[pl.BlockSpec((tile_rows, cols), lambda i: (i, 0))],
            out_specs=pl.BlockSpec((tile_rows, cols), lambda i: (i, 0)),
        ),
        compiler_params=pltpu.CompilerParams(
            # Single grid axis is fully parallel -> sharded across both
            # TensorCores on v7x megacore; neutral on v5e/v6e.
            dimension_semantics=("parallel",),
            # ~8 MiB blocks * (in + out) * double buffering ~= 32 MiB.
            vmem_limit_bytes=_VMEM_LIMIT_BYTES,
        ),
        # Optional: alias the output onto a donated input buffer (halves HBM footprint
        # when the caller no longer needs the activation). Off by default for safety.
        input_output_aliases=({0: 0} if donate_input else {}),
    )(x2)

    return out.reshape(x.shape)


def gelu_ref(x: jax.Array) -> jax.Array:
    xf = x.astype(jnp.float32)
    return (xf * 0.5 * (1.0 + jax.lax.erf(xf / jnp.sqrt(jnp.float32(2.0))))).astype(x.dtype)


if __name__ == "__main__":
    # Shape implied by the module's elementwise forward: batch=2, seq=8, hidden=32.
    x = jax.random.normal(jax.random.PRNGKey(0), (2, 8, 32), dtype=jnp.float32)
    y = gelu_pallas(x)
    jax.block_until_ready(y)
    y_ref = gelu_ref(x)
    assert y.shape == x.shape and y.dtype == x.dtype
    assert jnp.allclose(y, y_ref, atol=1e-5, rtol=1e-5), "mismatch vs reference gelu (f32)"

    # Lane-dense slab with a multi-step grid and a partial (masked) final block:
    # n = 13*40*128 -> (65, 1024) with tile_rows=16 -> grid of 5 steps, last partial.
    x2 = jax.random.normal(jax.random.PRNGKey(1), (13, 40, 128), dtype=jnp.float32)
    y2 = gelu_pallas(x2)
    jax.block_until_ready(y2)
    assert y2.shape == x2.shape and y2.dtype == x2.dtype
    assert jnp.allclose(y2, gelu_ref(x2), atol=1e-5, rtol=1e-5), "mismatch (lane-dense path)"

    # Ragged bf16 shape (size not a multiple of 128) exercises the no-pad fallback path.
    x3 = jax.random.normal(jax.random.PRNGKey(2), (3, 7, 33), dtype=jnp.bfloat16)
    y3 = gelu_pallas(x3)
    jax.block_until_ready(y3)
    assert y3.shape == x3.shape and y3.dtype == x3.dtype
    assert jnp.allclose(y3.astype(jnp.float32), gelu_ref(x3).astype(jnp.float32),
                        atol=2e-2, rtol=2e-2), "mismatch vs reference gelu (bf16, ragged)"

    print("KERNEL_OK")
</pallas_src>

<mosaic_0001>
module attributes {stable_mosaic.version = 11 : i64} {
  func.func @_gelu_kernel(%arg0: i32, %arg1: memref<1x512xf32, #tpu.memory_space<vmem>>, %arg2: memref<1x512xf32, #tpu.memory_space<vmem>>) attributes {dimension_semantics = [#tpu.dimension_semantics<parallel>], iteration_bounds = array<i64: 1>, scalar_prefetch = 0 : i64, scratch_operands = 0 : i64, tpu.core_type = #tpu.core_type<tc>, window_params = [{transform_indices = @transform_0, window_bounds = array<i64: 1, 512>}, {transform_indices = @transform_1, window_bounds = array<i64: 1, 512>}]} {
    %c0 = arith.constant 0 : index
    %c0_0 = arith.constant 0 : index
    %0 = vector.load %arg1[%c0, %c0_0] : memref<1x512xf32, #tpu.memory_space<vmem>>, vector<1x512xf32>
    %cst = arith.constant 5.000000e-01 : f32
    %1 = vector.broadcast %cst : f32 to vector<1x512xf32>
    %2 = arith.mulf %0, %1 : vector<1x512xf32>
    %cst_1 = arith.constant 0.707106769 : f32
    %3 = vector.broadcast %cst_1 : f32 to vector<1x512xf32>
    %4 = arith.mulf %0, %3 : vector<1x512xf32>
    %5 = math.erf %4 : vector<1x512xf32>
    %cst_2 = arith.constant 1.000000e+00 : f32
    %6 = vector.broadcast %cst_2 : f32 to vector<1x512xf32>
    %7 = arith.addf %6, %5 : vector<1x512xf32>
    %8 = arith.mulf %2, %7 : vector<1x512xf32>
    %c0_3 = arith.constant 0 : index
    %c0_4 = arith.constant 0 : index
    %9 = vector.load %arg2[%c0_3, %c0_4] : memref<1x512xf32, #tpu.memory_space<vmem>>, vector<1x512xf32>
    tpu.vector_store %arg2[%c0_3, %c0_4], %8 {strides = array<i32>} : memref<1x512xf32, #tpu.memory_space<vmem>>, vector<1x512xf32>,
    return
  }
  func.func @transform_0(%arg0: i32) -> (i32, i32) {
    %c0_i32 = arith.constant 0 : i32
    %c0_i32_0 = arith.constant 0 : i32
    return %arg0, %c0_i32 : i32, i32
  }
  func.func @transform_1(%arg0: i32) -> (i32, i32) {
    %c0_i32 = arith.constant 0 : i32
    %c0_i32_0 = arith.constant 0 : i32
    return %arg0, %c0_i32 : i32, i32
  }
}

</mosaic_0001>

<bundles_post_ra>
// kernel: tpu_custom_call.1
= control target key start
LH: loop header
LB: loop body
LE: loop exit
PB: predicated region body
PF: predicated region fallthrough
CT: control target
= control target key end

     0   :  { %6 = vsyncpa [#allocation3], 0  ;;  %s135_s0 = inlined_call_operand.hbm [shape: f32[1,512], index: 0, kind: input, shape index: {}]   ;;  %s136_s1 = inlined_call_operand.hbm [shape: f32[1,512], index: 1, kind: output, shape index: {}]  }
   0x1   :  { %7 = vsyncpa [#allocation4], 0  ;;  %s99_s6 = smov [#allocation2]   ;;  %s51_s10 = scalar_lea.hbm %s135_s0, 64 }
   0x2   :  { %s14_s7 = sshll.u32 %s99_s6, 4  ;;  %p52_p0 = scmp.ne.s32.totalorder %s135_s0, %s51_s10  ;;  %s15_s7 = int_to_ptr.vmem [resolvable:$true] %s14_s7 }
   0x3   :  { %p55_p1 = scmp.lt.u32.totalorder %s51_s10, %s135_s0 }
   0x5   :  { %p57_p2 = pnand %p55_p1, %p52_p0 }
   0x7   :  { %60 = shalt.err (!%p57_p2)
}
   0x8   :  { %s61_s15 = scalar_lea.vmem %s15_s7, 64  ;;  %p66_p4 = scmp.lt.s32.totalorder %s15_s7, %s15_s7 }
   0x9   :  { %p62_p3 = scmp.ne.s32.totalorder %s15_s7, %s61_s15  ;;  %p67_p5 = scmp.lt.s32.totalorder %s61_s15, %s61_s15 }
   0xb   :  { %p68_p6 = por %p67_p5, %p66_p4 }
   0xd   :  { %p69_p7 = pnand %p68_p6, %p62_p3 }
   0xf   :  { %72 = shalt.err (!%p69_p7)
}
  0x10   :  { %17 = dma.hbm_to_vmem [thread:$0]  %s135_s0, 64, %s15_s7, [#allocation3]  }
  0x11   :  { %95 = dma.done.wait [#allocation3], 64  }
  0x12   :  { %96 = vsyncadd [#allocation3], 4294967232  ;;  %v21_v0 = vld [vmem:[#allocation2] sm:$0xf]  ;;  %v27_v2 = vlaneseq  ;;  %s100_s18 = smov [#allocation5]  }
  0x13   :  { %v23_v1 = vmul.f32 0.70710677, %v21_v0  ;;  %v22_v3 = vmul.f32 0.5, %v21_v0  ;;  %s38_s19 = sshll.u32 %s100_s18, 4  ;;  %s39_s19 = int_to_ptr.vmem [resolvable:$true] %s38_s19 }
  0x14   :  { %vm29_vm0 = vcmp.lt.s32.totalorder %v27_v2, 512  ;;  %s73_s20 = scalar_lea.vmem %s39_s19, 64  ;;  %p78_p9 = scmp.lt.s32.totalorder %s39_s19, %s39_s19 }
  0x15   :  { %49 = verf.f32 %v23_v1  ;;  %p74_p8 = scmp.ne.s32.totalorder %s39_s19, %s73_s20  ;;  %p79_p10 = scmp.lt.s32.totalorder %s73_s20, %s73_s20 }
  0x17   :  { %p80_p11 = por %p79_p10, %p78_p9 }
  0x19   :  { %p81_p12 = pnand %p80_p11, %p74_p8 }
  0x1f   :  { %v50_v4 = vpop.eup %49 }
  0x20   :  { %v25_v5 = vadd.f32 1.0, %v50_v4 }
  0x22   :  { %v26_v6 = vmul.f32 %v25_v5, %v22_v3 }
  0x24   :  { %31 = vst.msk [vmem:[#allocation5] sm:$0xf] %vm29_vm0, %v26_v6 }
  0x25   :  { %84 = shalt.err (!%p81_p12)
}
  0x26   :  { %s85_s22 = scalar_lea.hbm %s136_s1, 64 }
  0x27   :  { %p86_p13 = scmp.ne.s32.totalorder %s136_s1, %s85_s22  ;;  %p89_p0 = scmp.lt.u32.totalorder %s85_s22, %s136_s1 }
  0x29   :  { %p91_p1 = pnand %p89_p0, %p86_p13 }
  0x2b   :  { %94 = shalt.err (!%p91_p1)
}
  0x2c   :  { %41 = dma.vmem_to_hbm [thread:$0]  %s39_s19, 64, %s136_s1, [#allocation4]  }
  0x2d   :  { %97 = dma.done.wait [#allocation4], 64  }
  0x2e   :  { %98 = vsyncadd [#allocation4], 4294967232 }
  0x2f   :  { %45 = vsyncpa [#allocation3], 1 }
  0x30   :  { %46 = vsyncpa [#allocation4], 1 }

</bundles_post_ra>
